<compile_context>
chip_gen: v5e
topology: v5e:2x2
jax: 0.10.0
libtpu: 0.0.40
codegen_flags: <defaults>
</compile_context>

<pallas_src>
import functools

import jax
import jax.numpy as jnp
from jax import lax
from jax.experimental import pallas as pl
from jax.experimental.pallas import tpu as pltpu

_MIB = 1024 * 1024


def _label_smoothing_kernel(pred_ref, tgt_ref, *rest,
                            confidence, smooth_val, has_weight,
                            c_real, n_real, tile_n):
    if has_weight:
        w_ref, out_ref = rest
    else:
        (out_ref,) = rest

    i = pl.program_id(0)

    # The HBM->VMEM DMA stays in the input dtype (bf16 halves HBM traffic);
    # all math is f32 in VMEM (v5e has no bf16 VPU/EUP).
    pred = pred_ref[...].astype(jnp.float32)                   # (tile_n, C)

    # log_softmax pieces along the class (lane) axis.
    m = jnp.max(pred, axis=-1, keepdims=True)
    shifted = pred - m
    lse = jnp.log(jnp.sum(jnp.exp(shifted), axis=-1, keepdims=True))

    # Target-column mask (scatter_ equivalent), one True per row.
    tgt = tgt_ref[...]                                          # (tile_n, 1) int32
    col = lax.broadcasted_iota(jnp.int32, shifted.shape, 1)
    tgt_mask = col == tgt

    if has_weight:
        w = w_ref[...].astype(jnp.float32)                      # (1, C)
        w_sum = jnp.sum(w, axis=-1, keepdims=True)              # (1, 1)
        sw = shifted * w                                        # (tile_n, C)
        # sum_c(logp * w) = sum_c(shifted * w) - lse * sum(w)
        row_sum = jnp.sum(sw, axis=-1, keepdims=True) - lse * w_sum
        # logp_w[target] = (shifted*w)[target] - lse * w[target]
        w_tgt = jnp.sum(jnp.where(tgt_mask, w, 0.0), axis=-1, keepdims=True)
        tgt_val = (jnp.sum(jnp.where(tgt_mask, sw, 0.0), axis=-1, keepdims=True)
                   - lse * w_tgt)
    else:
        # rowsum(logp) = rowsum(shifted) - C * lse   (no dense logp tensor)
        row_sum = (jnp.sum(shifted, axis=-1, keepdims=True)
                   - jnp.float32(c_real) * lse)
        # logp[target] = shifted[target] - lse
        tgt_val = jnp.sum(jnp.where(tgt_mask, shifted, 0.0),
                          axis=-1, keepdims=True) - lse

    # sum_c(-true_dist * logp) folded:
    #   -(smooth_val * rowsum(logp) + (confidence - smooth_val) * logp[target])
    row_loss = -(jnp.float32(smooth_val) * row_sum
                 + jnp.float32(confidence - smooth_val) * tgt_val)  # (tile_n, 1)

    # Mask batch-padding rows and reduce the tile to a single partial sum, so
    # the output is a few bytes per grid step (no masked wide stores, ~no
    # output VMEM) and the final mean is a hierarchical sum in the wrapper.
    row = lax.broadcasted_iota(jnp.int32, row_loss.shape, 0)
    valid = (i * tile_n + row) < n_real
    partial = jnp.sum(jnp.where(valid, row_loss, 0.0), axis=0, keepdims=True)
    out_ref[...] = partial.reshape(1, 1, 1)


def _vmem_plan():
    """(working-set budget, vmem_limit_bytes), sized from physical VMEM.

    ~40% of physical VMEM for pipeline buffers + kernel temporaries, capped:
      v5e / v6e (128 MiB physical) -> 40 MiB budget, 56 MiB vmem limit
      v7x       ( 64 MiB physical) -> ~25 MiB budget, ~41 MiB vmem limit
    """
    phys = 64 * _MIB                                  # conservative fallback
    try:
        phys = int(pltpu.get_tpu_info().vmem_capacity_bytes)
    except Exception:
        pass
    budget = max(8 * _MIB, min(phys * 2 // 5, 40 * _MIB))
    limit = min(phys - phys // 8, budget + 16 * _MIB)
    limit = max(limit, budget + 2 * _MIB)
    return budget, limit


def _pick_tile_n(n, c, itemsize, budget):
    """Largest row tile whose per-step VMEM working set fits `budget`.

    Charged per row:
      2 * C * itemsize : double-buffered pred tile (input dtype)
      4 * C * 4        : worst-case live (tile_n, C) kernel temporaries
                         (shifted, exp, iota/mask, select results)
      2 * 512          : (tile_n,1) int32 target column; lane dim pads 1->128,
                         double-buffered
    Rounded to the input dtype's sublane packing multiple.
    """
    row_bytes = 2 * c * itemsize + 4 * c * 4 + 2 * 512
    mult = {4: 8, 2: 16, 1: 32}.get(itemsize, 8)
    rows = max(mult, (budget // row_bytes) // mult * mult)
    n_pad = -(-n // mult) * mult
    return min(rows, n_pad), mult


def label_smoothing_loss(pred, target, *, classes, smoothing=0.1, weight=None,
                         tile_n=None):
    """Pallas equivalent of LabelSmoothingLoss.forward.

    pred:   (N, C) float32 or bfloat16 logits
    target: (N,)   integer class indices
    weight: optional (C,) per-class weight (None => no weighting)
    returns: scalar float32 loss (mean over the batch)
    """
    assert 0 <= smoothing < 1
    n, c = pred.shape
    assert c == classes
    confidence = 1.0 - smoothing
    smooth_val = smoothing / (classes - 1) if classes > 1 else 0.0

    itemsize = jnp.dtype(pred.dtype).itemsize
    budget, vmem_limit = _vmem_plan()
    auto_tile, mult = _pick_tile_n(n, c, itemsize, budget)
    if tile_n is None:
        tile_n = auto_tile
    tile_n = max(mult, (tile_n // mult) * mult)

    # Pad the batch so the grid covers it exactly; padded rows are masked out
    # inside the kernel, so they cannot bias the mean.
    num_tiles = -(-n // tile_n)
    n_pad = num_tiles * tile_n
    if n_pad != n:
        pred = jnp.pad(pred, ((0, n_pad - n), (0, 0)))
        target = jnp.pad(target, (0, n_pad - n))
    tgt2d = target.astype(jnp.int32).reshape(n_pad, 1)

    has_weight = weight is not None
    inputs = [pred, tgt2d]
    in_specs = [
        pl.BlockSpec((tile_n, c), lambda i: (i, 0)),   # pred tile
        pl.BlockSpec((tile_n, 1), lambda i: (i, 0)),   # target column
    ]
    # TODO(synk): on v7x with huge C, if the pred DMA is still exposed, add
    # pipeline_mode=pl.Buffered(3) on the pred BlockSpec only.
    if has_weight:
        w2d = weight.astype(jnp.float32).reshape(1, c)
        inputs.append(w2d)
        in_specs.append(pl.BlockSpec((1, c), lambda i: (0, 0)))  # class weight

    kernel = functools.partial(
        _label_smoothing_kernel,
        confidence=confidence,
        smooth_val=smooth_val,
        has_weight=has_weight,
        c_real=c,
        n_real=n,
        tile_n=tile_n,
    )

    cost = pl.CostEstimate(
        flops=(8 if has_weight else 6) * n_pad * c,
        transcendentals=n_pad * c + n_pad,
        bytes_accessed=(n_pad * c * itemsize + n_pad * 4
                        + (c * 4 if has_weight else 0) + num_tiles * 4),
    )

    # Each grid step writes one f32 partial sum; no carried state, so the row
    # axis is "parallel" (megacore-shardable).
    # TODO(synk): on v7x, verify both TensorCores are used; if one sits idle,
    # switch this axis to pltpu.CORE_PARALLEL.
    partials = pl.pallas_call(
        kernel,
        out_shape=jax.ShapeDtypeStruct((num_tiles, 1, 1), jnp.float32),
        grid_spec=pltpu.PrefetchScalarGridSpec(
            num_scalar_prefetch=0,
            grid=(num_tiles,),
            in_specs=in_specs,
            out_specs=pl.BlockSpec((1, 1, 1), lambda i: (i, 0, 0)),
        ),
        compiler_params=pltpu.CompilerParams(
            dimension_semantics=("parallel",),
            vmem_limit_bytes=int(vmem_limit),
        ),
        cost_estimate=cost,
    )(*inputs)

    # Hierarchical mean: per-tile sums in-kernel, tiny cross-tile sum here.
    return jnp.sum(partials) / jnp.float32(n)


def _reference(pred, target, *, classes, smoothing=0.1, weight=None):
    logp = jax.nn.log_softmax(pred.astype(jnp.float32), axis=-1)
    if weight is not None:
        logp = logp * weight.astype(jnp.float32)[None, :]
    true_dist = jnp.full_like(logp, smoothing / (classes - 1))
    true_dist = true_dist.at[jnp.arange(pred.shape[0]), target].set(1.0 - smoothing)
    return jnp.mean(jnp.sum(-true_dist * logp, axis=-1))


if __name__ == "__main__":
    key = jax.random.PRNGKey(0)
    k1, k2, k3, k4, k5 = jax.random.split(key, 5)

    N, C = 16, 8
    smoothing = 0.1
    pred = jax.random.normal(k1, (N, C), dtype=jnp.float32)
    target = jax.random.randint(k2, (N,), 0, C, dtype=jnp.int32)

    # 1) module default config: weight=None, f32 logits.
    loss = label_smoothing_loss(pred, target, classes=C, smoothing=smoothing)
    jax.block_until_ready(loss)
    ref = _reference(pred, target, classes=C, smoothing=smoothing)
    assert jnp.allclose(loss, ref, atol=1e-4, rtol=1e-4), (loss, ref)

    # 2) per-class weight + ragged batch (row padding + in-kernel row mask).
    N2 = 13
    pred2 = jax.random.normal(k3, (N2, C), dtype=jnp.float32)
    target2 = target[:N2]
    weight = jnp.linspace(0.5, 1.5, C, dtype=jnp.float32)
    loss2 = label_smoothing_loss(pred2, target2, classes=C,
                                 smoothing=smoothing, weight=weight)
    jax.block_until_ready(loss2)
    ref2 = _reference(pred2, target2, classes=C, smoothing=smoothing, weight=weight)
    assert jnp.allclose(loss2, ref2, atol=1e-4, rtol=1e-4), (loss2, ref2)

    # 3) bf16 logits (bf16 DMA, f32 compute in VMEM; tile rounded to 16 rows).
    pred_bf16 = pred.astype(jnp.bfloat16)
    loss3 = label_smoothing_loss(pred_bf16, target, classes=C, smoothing=smoothing)
    jax.block_until_ready(loss3)
    ref3 = _reference(pred_bf16, target, classes=C, smoothing=smoothing)
    assert jnp.allclose(loss3, ref3, atol=1e-4, rtol=1e-4), (loss3, ref3)

    # 4) class count that is NOT a multiple of 128 (exercises padded-lane
    #    masking in the lane reductions), with weights and a ragged batch.
    N4, C4 = 24, 130
    pred4 = jax.random.normal(k4, (N4, C4), dtype=jnp.float32)
    target4 = jax.random.randint(k5, (N4,), 0, C4, dtype=jnp.int32)
    weight4 = jnp.linspace(0.25, 2.0, C4, dtype=jnp.float32)
    loss4 = label_smoothing_loss(pred4, target4, classes=C4,
                                 smoothing=smoothing, weight=weight4)
    jax.block_until_ready(loss4)
    ref4 = _reference(pred4, target4, classes=C4, smoothing=smoothing,
                      weight=weight4)
    assert jnp.allclose(loss4, ref4, atol=1e-4, rtol=1e-4), (loss4, ref4)

    print("KERNEL_OK")
</pallas_src>

<mosaic_0001>
module attributes {stable_mosaic.version = 11 : i64} {
  func.func @_label_smoothing_kernel(%arg0: i32, %arg1: memref<16x8xf32, #tpu.memory_space<vmem>>, %arg2: memref<16x1xi32, #tpu.memory_space<vmem>>, %arg3: memref<1x1x1xf32, #tpu.memory_space<vmem>>) attributes {dimension_semantics = [#tpu.dimension_semantics<parallel>], iteration_bounds = array<i64: 1>, scalar_prefetch = 0 : i64, scratch_operands = 0 : i64, tpu.core_type = #tpu.core_type<tc>, window_params = [{transform_indices = @transform_0, window_bounds = array<i64: 16, 8>}, {transform_indices = @transform_1, window_bounds = array<i64: 16, 1>}, {transform_indices = @transform_2, window_bounds = array<i64: 1, 1, 1>}]} {
    %c0 = arith.constant 0 : index
    %c0_0 = arith.constant 0 : index
    %0 = vector.load %arg1[%c0, %c0_0] : memref<16x8xf32, #tpu.memory_space<vmem>>, vector<16x8xf32>
    %cst = arith.constant dense<0xFF800000> : vector<16xf32>
    %1 = vector.multi_reduction <maximumf>, %0, %cst [1] : vector<16x8xf32> to vector<16xf32>
    %2 = vector.shape_cast %1 : vector<16xf32> to vector<16x1xf32>
    %3 = vector.broadcast %2 : vector<16x1xf32> to vector<16x8xf32>
    %4 = arith.subf %0, %3 : vector<16x8xf32>
    %5 = math.exp %4 : vector<16x8xf32>
    %cst_1 = arith.constant dense<0.000000e+00> : vector<16xf32>
    %6 = vector.multi_reduction <add>, %5, %cst_1 [1] : vector<16x8xf32> to vector<16xf32>
    %7 = vector.shape_cast %6 : vector<16xf32> to vector<16x1xf32>
    %8 = math.log %7 : vector<16x1xf32>
    %c0_2 = arith.constant 0 : index
    %c0_3 = arith.constant 0 : index
    %9 = vector.load %arg2[%c0_2, %c0_3] : memref<16x1xi32, #tpu.memory_space<vmem>>, vector<16x1xi32>
    %10 = tpu.iota {dimensions = array<i32: 1>} : vector<16x8xi32>
    %11 = vector.broadcast %9 : vector<16x1xi32> to vector<16x8xi32>
    %12 = arith.cmpi eq, %10, %11 : vector<16x8xi32>
    %cst_4 = arith.constant dense<0.000000e+00> : vector<16xf32>
    %13 = vector.multi_reduction <add>, %4, %cst_4 [1] : vector<16x8xf32> to vector<16xf32>
    %14 = vector.shape_cast %13 : vector<16xf32> to vector<16x1xf32>
    %cst_5 = arith.constant 8.000000e+00 : f32
    %15 = vector.broadcast %cst_5 : f32 to vector<16x1xf32>
    %16 = arith.mulf %15, %8 : vector<16x1xf32>
    %17 = arith.subf %14, %16 : vector<16x1xf32>
    %cst_6 = arith.constant 0.000000e+00 : f32
    %18 = vector.broadcast %cst_6 : f32 to vector<16x8xf32>
    %19 = arith.select %12, %4, %18 : vector<16x8xi1>, vector<16x8xf32>
    %cst_7 = arith.constant dense<0.000000e+00> : vector<16xf32>
    %20 = vector.multi_reduction <add>, %19, %cst_7 [1] : vector<16x8xf32> to vector<16xf32>
    %21 = vector.shape_cast %20 : vector<16xf32> to vector<16x1xf32>
    %22 = arith.subf %21, %8 : vector<16x1xf32>
    %cst_8 = arith.constant 0.0142857144 : f32
    %23 = vector.broadcast %cst_8 : f32 to vector<16x1xf32>
    %24 = arith.mulf %23, %17 : vector<16x1xf32>
    %cst_9 = arith.constant 0.885714293 : f32
    %25 = vector.broadcast %cst_9 : f32 to vector<16x1xf32>
    %26 = arith.mulf %25, %22 : vector<16x1xf32>
    %27 = arith.addf %24, %26 : vector<16x1xf32>
    %cst_10 = arith.constant 0.000000e+00 : f32
    %28 = vector.broadcast %cst_10 : f32 to vector<16x1xf32>
    %29 = arith.subf %28, %27 : vector<16x1xf32>
    %30 = tpu.iota {dimensions = array<i32: 0>} : vector<16x1xi32>
    %c16_i32 = arith.constant 16 : i32
    %31 = arith.muli %arg0, %c16_i32 : i32
    %32 = vector.broadcast %31 : i32 to vector<16x1xi32>
    %33 = arith.addi %32, %30 : vector<16x1xi32>
    %c16_i32_11 = arith.constant 16 : i32
    %34 = vector.broadcast %c16_i32_11 : i32 to vector<16x1xi32>
    %35 = arith.cmpi slt, %33, %34 : vector<16x1xi32>
    %cst_12 = arith.constant 0.000000e+00 : f32
    %36 = vector.broadcast %cst_12 : f32 to vector<16x1xf32>
    %37 = arith.select %35, %29, %36 : vector<16x1xi1>, vector<16x1xf32>
    %cst_13 = arith.constant dense<0.000000e+00> : vector<1xf32>
    %38 = vector.multi_reduction <add>, %37, %cst_13 [0] : vector<16x1xf32> to vector<1xf32>
    %39 = vector.shape_cast %38 : vector<1xf32> to vector<1x1xf32>
    %40 = vector.shape_cast %39 : vector<1x1xf32> to vector<1x1x1xf32>
    %c0_14 = arith.constant 0 : index
    %c0_15 = arith.constant 0 : index
    %c0_16 = arith.constant 0 : index
    %41 = vector.load %arg3[%c0_14, %c0_15, %c0_16] : memref<1x1x1xf32, #tpu.memory_space<vmem>>, vector<1x1x1xf32>
    tpu.vector_store %arg3[%c0_14, %c0_15, %c0_16], %40 {strides = array<i32>} : memref<1x1x1xf32, #tpu.memory_space<vmem>>, vector<1x1x1xf32>,
    return
  }
  func.func @transform_0(%arg0: i32) -> (i32, i32) {
    %c0_i32 = arith.constant 0 : i32
    %c0_i32_0 = arith.constant 0 : i32
    return %arg0, %c0_i32 : i32, i32
  }
  func.func @transform_1(%arg0: i32) -> (i32, i32) {
    %c0_i32 = arith.constant 0 : i32
    %c0_i32_0 = arith.constant 0 : i32
    return %arg0, %c0_i32 : i32, i32
  }
  func.func @transform_2(%arg0: i32) -> (i32, i32, i32) {
    %c0_i32 = arith.constant 0 : i32
    %c0_i32_0 = arith.constant 0 : i32
    %c0_i32_1 = arith.constant 0 : i32
    return %arg0, %c0_i32, %c0_i32_0 : i32, i32, i32
  }
}

</mosaic_0001>

<bundles_post_ra>
// kernel: tpu_custom_call.1
= control target key start
LH: loop header
LB: loop body
LE: loop exit
PB: predicated region body
PF: predicated region fallthrough
CT: control target
= control target key end

     0   :  { %vm14_vm0 = vcmask 64512   ;;  %v151_v3 = vmov 0   ;;  %s191_s0 = inlined_call_operand.vmem [shape: f32[16,8], index: 0, kind: input, shape index: {}]   ;;  %s192_s1 = inlined_call_operand.vmem [shape: s32[16,1], index: 1, kind: input, shape index: {}]   ;;  %s193_s2 = inlined_call_operand.hbm [shape: f32[1,1,1], index: 2, kind: output, shape index: {}]  }
   0x1   :  { %v12_v0 = vld [vmem:[%s191_s0] sm:$0xff]  ;;  %115 = vset.pattern.permute.xlu1 %v151_v3  ;;  %116 = vset.pattern.permute.xlu0 %v151_v3 }
   0x2   :  { %v37_v1 = vld [vmem:[%s192_s1] sm:$0xff]  ;;  %v15_v2 = vsel %vm14_vm0, %v12_v0, -inf }
   0x3   :  { %7 = vsyncpa [#allocation3], 0  ;;  %16 = vmax.xlane.f32.xlu0 %v15_v2  ;;  %42 = vperm.xlu1 %115, %v37_v1   ;;  %v13_v4 = vld [vmem:[%s191_s0 + $0x8] sm:$0xff]  ;;  %v39_v10 = vlaneseq  ;;  %s152_s0 = smov [#allocation2]   ;;  %s104_s19 = sshll.u32 %s193_s2, 4  ;;  %vm95_vm3 = vcmask 0   ;;  %s105_s19 = int_to_ptr.hbm [resolvable:$true] %s104_s19 }
   0x4   :  { %v18_v5 = vsel %vm14_vm0, %v13_v4, -inf  ;;  %v38_v6 = vld [vmem:[%s192_s1 + $0x8] sm:$0xff]  ;;  %s102_s1 = sshll.u32 %s152_s0, 4  ;;  %s103_s1 = int_to_ptr.vmem [resolvable:$true] %s102_s1 }
   0x5   :  { %v40_v13 = vand.u32 127, %v39_v10 }
   0xb   :  { %19 = vmax.xlane.f32.xlu0 %v18_v5  ;;  %45 = vperm.xlu1 %115, %v38_v6  }
  0x75   :  { %v43_v7 = vpop.permute.xlu1 %42 }
  0x76   :  { %v17_v8 = vpop.xlane.xlu0 %16  ;;  %vm47_vm2 = vcmp.eq.s32.totalorder %v40_v13, %v43_v7 }
  0x77   :  { %v21_v9 = vsub.f32 %v12_v0, %v17_v8 }
  0x79   :  { %v23_v11 = vmul.f32 1.442695, %v21_v9  ;;  %v49_v12 = vsel %vm14_vm0, %v21_v9, 0.0  ;;  %v59_v25 = vsel %vm47_vm2, %v21_v9, 0.0 }
  0x7a   :  { %50 = vadd.xlane.f32.xlu0 %v49_v12  ;;  %v61_v26 = vsel %vm14_vm0, %v59_v25, 0.0 }
  0x7b   :  { %117 = vpow2.f32 %v23_v11 }
  0x7d   :  { %v46_v14 = vpop.permute.xlu1 %45 }
  0x7e   :  { %v20_v15 = vpop.xlane.xlu0 %19  ;;  %vm48_vm1 = vcmp.eq.s32.totalorder %v40_v13, %v46_v14 }
  0x7f   :  { %v22_v16 = vsub.f32 %v13_v4, %v20_v15 }
  0x81   :  { %v118_v17 = vpop.eup %117  ;;  %v25_v18 = vmul.f32 1.442695, %v22_v16  ;;  %v52_v19 = vsel %vm14_vm0, %v22_v16, 0.0  ;;  %v60_v20 = vsel %vm48_vm1, %v22_v16, 0.0 }
  0x82   :  { %53 = vadd.xlane.f32.xlu1 %v52_v19  ;;  %v27_v21 = vsel %vm14_vm0, %v118_v17, 0.0  ;;  %v64_v22 = vsel %vm14_vm0, %v60_v20, 0.0 }
  0x83   :  { %119 = vpow2.f32 %v25_v18  ;;  %28 = vadd.xlane.f32.xlu2 %v27_v21  ;;  %65 = vadd.xlane.f32.xlu0 %v64_v22 }
  0x89   :  { %v120_v23 = vpop.eup %119 }
  0x8a   :  { %v30_v24 = vsel %vm14_vm0, %v120_v23, 0.0 }
  0x8b   :  { %31 = vadd.xlane.f32.xlu2 %v30_v24 }
  0x93   :  { %62 = vadd.xlane.f32.xlu2 %v61_v26 }
  0xed   :  { %v51_v29 = vpop.xlane.xlu0 %50 }
  0xf5   :  { %v54_v41 = vpop.xlane.xlu1 %53 }
  0xf6   :  { %v29_v27 = vpop.xlane.xlu2 %28  ;;  %v66_v37 = vpop.xlane.xlu0 %65 }
  0xf7   :  { %121 = vlog2.f32 %v29_v27 }
  0xfd   :  { %v122_v28 = vpop.eup %121 }
  0xfe   :  { %v34_v30 = vmul.f32 0.6931472, %v122_v28  ;;  %v32_v31 = vpop.xlane.xlu2 %31 }
  0xff   :  { %123 = vlog2.f32 %v32_v31 }
 0x100   :  { %v55_v32 = vmul.f32 8.0, %v34_v30 }
 0x102   :  { %v57_v36 = vsub.f32 %v51_v29, %v55_v32 }
 0x104   :  { %v69_v44 = vmul.f32 0.014285714, %v57_v36 }
 0x105   :  { %v124_v33 = vpop.eup %123 }
 0x106   :  { %v36_v34 = vmul.f32 0.6931472, %v124_v33  ;;  %v63_v35 = vpop.xlane.xlu2 %62 }
 0x107   :  { %v67_v38 = vsub.f32 %v63_v35, %v34_v30 }
 0x108   :  { %v56_v39 = vmul.f32 8.0, %v36_v34  ;;  %v68_v40 = vsub.f32 %v66_v37, %v36_v34 }
 0x109   :  { %v71_v42 = vmul.f32 0.8857143, %v67_v38 }
 0x10a   :  { %v58_v43 = vsub.f32 %v54_v41, %v56_v39  ;;  %v72_v46 = vmul.f32 0.8857143, %v68_v40 }
 0x10b   :  { %v73_v47 = vadd.f32 %v71_v42, %v69_v44 }
 0x10c   :  { %v70_v45 = vmul.f32 0.014285714, %v58_v43 }
 0x10d   :  { %v75_v50 = vsub.f32 0.0, %v73_v47 }
 0x10e   :  { %v74_v48 = vadd.f32 %v72_v46, %v70_v45 }
 0x110   :  { %v76_v49 = vsub.f32 0.0, %v74_v48 }
 0x112   :  { %v88_v51 = vadd.f32 %v76_v49, %v75_v50 }
 0x114   :  { %v89_v52 = vrot.slane %v88_v51, 4 }
 0x116   :  { %v90_v53 = vadd.f32 %v89_v52, %v88_v51 }
 0x118   :  { %v91_v54 = vrot.slane %v90_v53, 2 }
 0x11a   :  { %v92_v55 = vadd.f32 %v91_v54, %v90_v53 }
 0x11c   :  { %v93_v56 = vrot.slane %v92_v55, 1 }
 0x11e   :  { %v94_v57 = vadd.f32 %v93_v56, %v92_v55 }
 0x120   :  { %96 = vst.msk [vmem:[#allocation2] sm:$0x1] %vm95_vm3, %v94_v57 }
 0x121   :  { %107 = dma.vmem_to_hbm [thread:$0]  %s103_s1, 16, %s105_s19, [#allocation3]  }
 0x122   :  { %149 = dma.done.wait [#allocation3], 16  }
 0x123   :  { %150 = vsyncadd [#allocation3], 4294967280 }
 0x124   :  { %112 = vsyncpa [#allocation3], 1 }

</bundles_post_ra>
